<compile_context>
chip_gen: v5e
topology: v5e:2x2
jax: 0.10.0
libtpu: 0.0.40
codegen_flags: <defaults>
</compile_context>

<pallas_src>
import functools

import jax
import jax.numpy as jnp
from jax.experimental import pallas as pl
from jax.experimental.pallas import tpu as pltpu


def _round_up(x, m):
    return ((x + m - 1) // m) * m


def _pick_tile(n_rows, tile_e):
    tile_e = max(128, (int(tile_e) // 128) * 128)          # multiple of 128
    return min(tile_e, _round_up(max(int(n_rows), 1), 128))


def _vmem_limit_bytes(tile, hf1, hf2, d1, d2, resident=0):
    """Explicit scoped-VMEM budget: double-buffered inputs/weights + scratch."""
    bf, f4 = 2, 4
    inputs = 2 * tile * (hf1 + hf2) * bf                   # streamed edge tiles
    weights = 2 * ((hf1 + hf2) * d1 * bf + d1 * d2 * bf + (d1 + 2 * d2) * f4)
    outputs = 2 * tile * f4
    scratch = tile * d1 * (f4 + bf) + tile * d2 * f4 + tile * (hf1 + hf2) * bf
    total = inputs + weights + outputs + scratch + resident
    return int(min(max(2 * total, 32 << 20), 64 << 20))


# ---------------------------------------------------------------------------
# Kernels
# ---------------------------------------------------------------------------

def _edge_mlp_math(f1, f2, w1a, w1b, b1, w2, b2, w3, b3_scalar):
    """Linear-ReLU-Linear-ReLU-Linear on one edge tile (edge axis = sublanes)."""
    # Layer 1 in split-W1 form: [f1 f2] @ W1 == f1 @ W1[:H1] + f2 @ W1[H1:]
    h1 = jnp.dot(f1, w1a, preferred_element_type=jnp.float32)
    h1 = h1 + jnp.dot(f2, w1b, preferred_element_type=jnp.float32)
    h1 = jnp.maximum(h1 + b1, 0.0)                          # (TILE, D1) f32
    h2 = jnp.dot(h1.astype(jnp.bfloat16), w2, preferred_element_type=jnp.float32)
    h2 = jnp.maximum(h2 + b2, 0.0)                          # (TILE, D2) f32
    # Final D2 -> 1 layer on the VPU + lane reduction (no N=1 MXU matmul).
    return jnp.sum(h2 * w3, axis=-1) + b3_scalar            # (TILE,)


def _pregathered_kernel(f1_ref, f2_ref, w1a_ref, w1b_ref, b1_ref,
                        w2_ref, b2_ref, w3_ref, b3_ref, o_ref):
    out = _edge_mlp_math(f1_ref[...], f2_ref[...], w1a_ref[...], w1b_ref[...],
                         b1_ref[...], w2_ref[...], b2_ref[...], w3_ref[...],
                         b3_ref[0])
    o_ref[...] = out[None, None, :].astype(o_ref.dtype)     # lane-dense (1,1,TILE)


def _fused_gather_kernel(col_ref, row_ref, emb_ref, w1a_ref, w1b_ref, b1_ref,
                         w2_ref, b2_ref, w3_ref, b3_ref, o_ref):
    # emb is VMEM-resident (constant index_map); gather the edge endpoints
    # in-kernel so the (E, H) features never round-trip through HBM.
    emb = emb_ref[...]                                       # (N_pad, H) f32
    f1 = jnp.take(emb, col_ref[...], axis=0,
                  mode="promise_in_bounds").astype(jnp.bfloat16)
    f2 = jnp.take(emb, row_ref[...], axis=0,
                  mode="promise_in_bounds").astype(jnp.bfloat16)
    out = _edge_mlp_math(f1, f2, w1a_ref[...], w1b_ref[...], b1_ref[...],
                         w2_ref[...], b2_ref[...], w3_ref[...], b3_ref[0])
    o_ref[...] = out[None, None, :].astype(o_ref.dtype)


# ---------------------------------------------------------------------------
# pallas_call wrappers
# ---------------------------------------------------------------------------

def _pregathered_call(f1, f2, w1a, w1b, b1, w2, b2, w3_row, b3, *, tile_e):
    e_pad, hf1 = f1.shape
    hf2 = f2.shape[1]
    d1 = w1a.shape[1]
    d2 = w2.shape[1]
    n_tiles = e_pad // tile_e
    full = lambda i: (0, 0)
    return pl.pallas_call(
        _pregathered_kernel,
        out_shape=jax.ShapeDtypeStruct((n_tiles, 1, tile_e), jnp.float32),
        grid_spec=pltpu.PrefetchScalarGridSpec(
            num_scalar_prefetch=0,
            grid=(n_tiles,),
            in_specs=[
                pl.BlockSpec((tile_e, hf1), lambda i: (i, 0)),   # emb[col] tile
                pl.BlockSpec((tile_e, hf2), lambda i: (i, 0)),   # emb[row] tile
                pl.BlockSpec((hf1, d1), full),                   # W1 top half
                pl.BlockSpec((hf2, d1), full),                   # W1 bottom half
                pl.BlockSpec((1, d1), full),                     # b1
                pl.BlockSpec((d1, d2), full),                    # W2
                pl.BlockSpec((1, d2), full),                     # b2
                pl.BlockSpec((1, d2), full),                     # w3 as row vector
                pl.BlockSpec(memory_space=pltpu.MemorySpace.SMEM),  # b3 scalar
            ],
            out_specs=pl.BlockSpec((1, 1, tile_e), lambda i: (i, 0, 0)),
        ),
        compiler_params=pltpu.CompilerParams(
            dimension_semantics=("parallel",),
            vmem_limit_bytes=_vmem_limit_bytes(tile_e, hf1, hf2, d1, d2)),
    )(f1, f2, w1a, w1b, b1, w2, b2, w3_row, b3)


def _fused_gather_call(col, row, emb_f32, w1a, w1b, b1, w2, b2, w3_row, b3,
                       *, tile_e):
    e_pad = col.shape[0]
    n_node, h = emb_f32.shape
    d1 = w1a.shape[1]
    d2 = w2.shape[1]
    n_tiles = e_pad // tile_e
    full = lambda i: (0, 0)
    resident = 2 * n_node * h * 4 + 2 * 2 * tile_e * 4      # emb + idx buffers
    return pl.pallas_call(
        _fused_gather_kernel,
        out_shape=jax.ShapeDtypeStruct((n_tiles, 1, tile_e), jnp.float32),
        grid_spec=pltpu.PrefetchScalarGridSpec(
            num_scalar_prefetch=0,
            grid=(n_tiles,),
            in_specs=[
                pl.BlockSpec((tile_e,), lambda i: (i,)),         # col idx tile
                pl.BlockSpec((tile_e,), lambda i: (i,)),         # row idx tile
                pl.BlockSpec((n_node, h), full),                 # resident emb
                pl.BlockSpec((h, d1), full),                     # W1 top half
                pl.BlockSpec((h, d1), full),                     # W1 bottom half
                pl.BlockSpec((1, d1), full),                     # b1
                pl.BlockSpec((d1, d2), full),                    # W2
                pl.BlockSpec((1, d2), full),                     # b2
                pl.BlockSpec((1, d2), full),                     # w3 as row vector
                pl.BlockSpec(memory_space=pltpu.MemorySpace.SMEM),  # b3 scalar
            ],
            out_specs=pl.BlockSpec((1, 1, tile_e), lambda i: (i, 0, 0)),
        ),
        compiler_params=pltpu.CompilerParams(
            dimension_semantics=("parallel",),
            vmem_limit_bytes=_vmem_limit_bytes(tile_e, h, h, d1, d2,
                                               resident=resident)),
    )(col, row, emb_f32, w1a, w1b, b1, w2, b2, w3_row, b3)


# ---------------------------------------------------------------------------
# Jitted forward paths
# ---------------------------------------------------------------------------

@functools.partial(jax.jit, static_argnames=("tile_e",))
def _forward_edge_pregathered(emb, col_p, row_p, params, tile_e):
    (w1, b1), (w2, b2), (w3, b3) = params
    h = emb.shape[1]
    emb_bf = emb.astype(jnp.bfloat16)
    # Padding is folded into the gather: col_p/row_p are already padded and
    # clamped to node 0, so there is no separate jnp.pad of the (E, H) tiles.
    f1 = jnp.take(emb_bf, col_p, axis=0)
    f2 = jnp.take(emb_bf, row_p, axis=0)
    return _pregathered_call(
        f1, f2, w1[:h].astype(jnp.bfloat16), w1[h:].astype(jnp.bfloat16), b1,
        w2.astype(jnp.bfloat16), b2, w3.reshape(1, -1), b3.reshape(-1),
        tile_e=tile_e)


@functools.partial(jax.jit, static_argnames=("tile_e",))
def _forward_edge_fused(emb, col_p, row_p, params, tile_e):
    (w1, b1), (w2, b2), (w3, b3) = params
    n, h = emb.shape
    n8 = _round_up(n, 8)
    emb_f32 = emb.astype(jnp.float32)
    if n8 != n:  # keep the in-kernel sublane gather on an aligned source
        emb_f32 = jnp.pad(emb_f32, ((0, n8 - n), (0, 0)))
    return _fused_gather_call(
        col_p, row_p, emb_f32,
        w1[:h].astype(jnp.bfloat16), w1[h:].astype(jnp.bfloat16), b1,
        w2.astype(jnp.bfloat16), b2, w3.reshape(1, -1), b3.reshape(-1),
        tile_e=tile_e)


@functools.partial(jax.jit, static_argnames=("n_pad", "tile_e"))
def _forward_node(emb, params, n_pad, tile_e):
    (w1, b1), (w2, b2), (w3, b3) = params
    n, h = emb.shape
    half = h // 2
    emb_bf = emb.astype(jnp.bfloat16)
    if n_pad != n:
        emb_bf = jnp.pad(emb_bf, ((0, n_pad - n), (0, 0)))
    # x @ W1 == x[:, :half] @ W1[:half] + x[:, half:] @ W1[half:]  (any split)
    return _pregathered_call(
        emb_bf[:, :half], emb_bf[:, half:],
        w1[:half].astype(jnp.bfloat16), w1[half:].astype(jnp.bfloat16), b1,
        w2.astype(jnp.bfloat16), b2, w3.reshape(1, -1), b3.reshape(-1),
        tile_e=tile_e)


# ---------------------------------------------------------------------------
# Public forward
# ---------------------------------------------------------------------------

_FUSED_STATUS = {}   # (N, H, tile, n_pad) -> bool (fused-gather path usable)


def _fused_budget_ok(n, h, tile):
    resident = 2 * _round_up(n, 8) * h * 4          # emb kept resident in VMEM
    work = 4 * tile * h * 2 + 2 * tile * 4 * h * 4  # gathered tiles + h1 scratch
    return (resident + work) < (24 << 20)           # conservative, v7x-safe


def _pad_indices(idx, n_pad):
    e = idx.shape[0]
    if n_pad == e:
        return idx
    return jnp.concatenate([idx, jnp.zeros((n_pad - e,), idx.dtype)])


def readout_edge_forward(emb, edge_index, batch, params,
                         learn_edge_att=True, tile_e=1024):
    """Forward pass of readout_edge (eval mode).

    emb:        (N, H) node embeddings
    edge_index: (2, E) int
    batch:      (N,)   graph ids (unused: see TODO(synk) at top)
    returns:    (E, 1) attention log-logits, or (N, 1) if learn_edge_att=False
    """
    del batch  # per-graph InstanceNorm omitted (MLP source not provided)

    if not learn_edge_att:
        n_rows = int(emb.shape[0])
        tile = _pick_tile(n_rows, tile_e)
        n_pad = _round_up(n_rows, tile)
        out = _forward_node(emb, params, n_pad=n_pad, tile_e=tile)
        return out.reshape(-1)[:n_rows, None]

    col = edge_index[0].astype(jnp.int32)
    row = edge_index[1].astype(jnp.int32)
    n_rows = int(col.shape[0])
    tile = _pick_tile(n_rows, tile_e)
    n_pad = _round_up(n_rows, tile)
    col_p = _pad_indices(col, n_pad)     # padded lanes read node 0, sliced off
    row_p = _pad_indices(row, n_pad)

    n, h = int(emb.shape[0]), int(emb.shape[1])
    key = (n, h, tile, n_pad)
    out = None
    if _fused_budget_ok(n, h, tile) and _FUSED_STATUS.get(key, True):
        try:
            out = _forward_edge_fused(emb, col_p, row_p, params, tile_e=tile)
            if key not in _FUSED_STATUS:
                # One-time numerical cross-check of the in-kernel gather path.
                check = _forward_edge_pregathered(emb, col_p, row_p, params,
                                                  tile_e=tile)
                ok = bool(jnp.allclose(out, check, atol=1e-2, rtol=1e-2))
                _FUSED_STATUS[key] = ok
                if not ok:
                    out = check
        except Exception:
            # In-kernel row gather not supported for this Mosaic version /
            # shape: fall back to the pre-gathered (XLA gather) path.
            _FUSED_STATUS[key] = False
            out = None
    if out is None:
        out = _forward_edge_pregathered(emb, col_p, row_p, params, tile_e=tile)
    return out.reshape(-1)[:n_rows, None]


# ---------------------------------------------------------------------------
# Params init + pure-JAX reference
# ---------------------------------------------------------------------------

def init_readout_edge_params(key, hidden_size, learn_edge_att=True):
    """Deterministic parameter init matching MLP([2H,4H,H,1]) / ([H,2H,H,1])."""
    if learn_edge_att:
        dims = [hidden_size * 2, hidden_size * 4, hidden_size, 1]
    else:
        dims = [hidden_size * 1, hidden_size * 2, hidden_size, 1]
    params = []
    for i in range(1, len(dims)):
        key, k_w, k_b = jax.random.split(key, 3)
        bound = float(dims[i - 1]) ** -0.5
        w = jax.random.uniform(k_w, (dims[i - 1], dims[i]), jnp.float32,
                               -bound, bound)
        b = jax.random.uniform(k_b, (1, dims[i]), jnp.float32, -bound, bound)
        params.append((w, b))
    return params


def _reference_forward(emb, edge_index, params, learn_edge_att=True):
    if learn_edge_att:
        col, row = edge_index[0], edge_index[1]
        x = jnp.concatenate([emb[col], emb[row]], axis=-1)
    else:
        x = emb
    (w1, b1), (w2, b2), (w3, b3) = params
    h = jnp.maximum(x @ w1 + b1, 0.0)
    h = jnp.maximum(h @ w2 + b2, 0.0)
    return h @ w3 + b3


if __name__ == "__main__":
    hidden_size = 32
    num_nodes = 12
    num_edges = 24
    num_graphs = 2

    key = jax.random.PRNGKey(0)
    k_emb, k_col, k_row, k_params = jax.random.split(key, 4)

    emb = jax.random.normal(k_emb, (num_nodes, hidden_size), jnp.float32)
    col = jax.random.randint(k_col, (num_edges,), 0, num_nodes, jnp.int32)
    row = jax.random.randint(k_row, (num_edges,), 0, num_nodes, jnp.int32)
    edge_index = jnp.stack([col, row], axis=0)                 # (2, E)
    batch = jnp.concatenate([
        jnp.zeros((num_nodes // num_graphs,), jnp.int32),
        jnp.ones((num_nodes - num_nodes // num_graphs,), jnp.int32),
    ])

    params = init_readout_edge_params(k_params, hidden_size,
                                      learn_edge_att=True)

    att_log_logits = readout_edge_forward(emb, edge_index, batch, params,
                                          learn_edge_att=True)
    att_log_logits = jax.block_until_ready(att_log_logits)

    ref = _reference_forward(emb, edge_index, params, learn_edge_att=True)
    assert att_log_logits.shape == (num_edges, 1)
    # bf16 matmuls (with f32 accumulation) => tolerance loosened vs f32 ref.
    err = jnp.max(jnp.abs(att_log_logits - ref))
    assert jnp.allclose(att_log_logits, ref, atol=2e-2, rtol=2e-2), err

    print("KERNEL_OK")
</pallas_src>

<mosaic_0001>
module attributes {stable_mosaic.version = 11 : i64} {
  func.func @_pregathered_kernel(%arg0: i32, %arg1: memref<128x32xbf16, #tpu.memory_space<vmem>>, %arg2: memref<128x32xbf16, #tpu.memory_space<vmem>>, %arg3: memref<32x128xbf16, #tpu.memory_space<vmem>>, %arg4: memref<32x128xbf16, #tpu.memory_space<vmem>>, %arg5: memref<1x128xf32, #tpu.memory_space<vmem>>, %arg6: memref<128x32xbf16, #tpu.memory_space<vmem>>, %arg7: memref<1x32xf32, #tpu.memory_space<vmem>>, %arg8: memref<1x32xf32, #tpu.memory_space<vmem>>, %arg9: memref<1xf32, #tpu.memory_space<smem>>, %arg10: memref<1x1x128xf32, #tpu.memory_space<vmem>>) attributes {dimension_semantics = [#tpu.dimension_semantics<parallel>], iteration_bounds = array<i64: 1>, scalar_prefetch = 0 : i64, scratch_operands = 0 : i64, tpu.core_type = #tpu.core_type<tc>, window_params = [{transform_indices = @transform_0, window_bounds = array<i64: 128, 32>}, {transform_indices = @transform_1, window_bounds = array<i64: 128, 32>}, {pipeline_mode = #tpu.pipeline_mode<synchronous>, transform_indices = @transform_2, window_bounds = array<i64: 32, 128>}, {pipeline_mode = #tpu.pipeline_mode<synchronous>, transform_indices = @transform_3, window_bounds = array<i64: 32, 128>}, {pipeline_mode = #tpu.pipeline_mode<synchronous>, transform_indices = @transform_4, window_bounds = array<i64: 1, 128>}, {pipeline_mode = #tpu.pipeline_mode<synchronous>, transform_indices = @transform_5, window_bounds = array<i64: 128, 32>}, {pipeline_mode = #tpu.pipeline_mode<synchronous>, transform_indices = @transform_6, window_bounds = array<i64: 1, 32>}, {pipeline_mode = #tpu.pipeline_mode<synchronous>, transform_indices = @transform_7, window_bounds = array<i64: 1, 32>}, {transform_indices = @transform_8, window_bounds = array<i64: 1>}, {transform_indices = @transform_9, window_bounds = array<i64: 1, 1, 128>}]} {
    %c0 = arith.constant 0 : index
    %c0_0 = arith.constant 0 : index
    %0 = vector.load %arg1[%c0, %c0_0] : memref<128x32xbf16, #tpu.memory_space<vmem>>, vector<128x32xbf16>
    %c0_1 = arith.constant 0 : index
    %c0_2 = arith.constant 0 : index
    %1 = vector.load %arg2[%c0_1, %c0_2] : memref<128x32xbf16, #tpu.memory_space<vmem>>, vector<128x32xbf16>
    %c0_3 = arith.constant 0 : index
    %c0_4 = arith.constant 0 : index
    %2 = vector.load %arg3[%c0_3, %c0_4] : memref<32x128xbf16, #tpu.memory_space<vmem>>, vector<32x128xbf16>
    %c0_5 = arith.constant 0 : index
    %c0_6 = arith.constant 0 : index
    %3 = vector.load %arg4[%c0_5, %c0_6] : memref<32x128xbf16, #tpu.memory_space<vmem>>, vector<32x128xbf16>
    %c0_7 = arith.constant 0 : index
    %c0_8 = arith.constant 0 : index
    %4 = vector.load %arg5[%c0_7, %c0_8] : memref<1x128xf32, #tpu.memory_space<vmem>>, vector<1x128xf32>
    %c0_9 = arith.constant 0 : index
    %c0_10 = arith.constant 0 : index
    %5 = vector.load %arg6[%c0_9, %c0_10] : memref<128x32xbf16, #tpu.memory_space<vmem>>, vector<128x32xbf16>
    %c0_11 = arith.constant 0 : index
    %c0_12 = arith.constant 0 : index
    %6 = vector.load %arg7[%c0_11, %c0_12] : memref<1x32xf32, #tpu.memory_space<vmem>>, vector<1x32xf32>
    %c0_13 = arith.constant 0 : index
    %c0_14 = arith.constant 0 : index
    %7 = vector.load %arg8[%c0_13, %c0_14] : memref<1x32xf32, #tpu.memory_space<vmem>>, vector<1x32xf32>
    %c0_15 = arith.constant 0 : index
    %8 = memref.load %arg9[%c0_15] : memref<1xf32, #tpu.memory_space<smem>>
    %cst = arith.constant dense<0.000000e+00> : vector<128x128xf32>
    %9 = tpu.matmul %0, %2, %cst {dimension_numbers = #tpu.dot_dimension_numbers<[1], [0], [0], [1], [0, 0, 1, 1], [], []>} : vector<128x32xbf16>, vector<32x128xbf16>, vector<128x128xf32> -> vector<128x128xf32>
    %cst_16 = arith.constant dense<0.000000e+00> : vector<128x128xf32>
    %10 = tpu.matmul %1, %3, %cst_16 {dimension_numbers = #tpu.dot_dimension_numbers<[1], [0], [0], [1], [0, 0, 1, 1], [], []>} : vector<128x32xbf16>, vector<32x128xbf16>, vector<128x128xf32> -> vector<128x128xf32>
    %11 = arith.addf %9, %10 : vector<128x128xf32>
    %12 = vector.broadcast %4 : vector<1x128xf32> to vector<128x128xf32>
    %13 = arith.addf %11, %12 : vector<128x128xf32>
    %cst_17 = arith.constant 0.000000e+00 : f32
    %14 = vector.broadcast %cst_17 : f32 to vector<128x128xf32>
    %15 = arith.maximumf %13, %14 : vector<128x128xf32>
    %16 = arith.truncf %15 : vector<128x128xf32> to vector<128x128xbf16>
    %cst_18 = arith.constant dense<0.000000e+00> : vector<128x32xf32>
    %17 = tpu.matmul %16, %5, %cst_18 {dimension_numbers = #tpu.dot_dimension_numbers<[1], [0], [0], [1], [0, 0, 1, 1], [], []>} : vector<128x128xbf16>, vector<128x32xbf16>, vector<128x32xf32> -> vector<128x32xf32>
    %18 = vector.broadcast %6 : vector<1x32xf32> to vector<128x32xf32>
    %19 = arith.addf %17, %18 : vector<128x32xf32>
    %cst_19 = arith.constant 0.000000e+00 : f32
    %20 = vector.broadcast %cst_19 : f32 to vector<128x32xf32>
    %21 = arith.maximumf %19, %20 : vector<128x32xf32>
    %22 = vector.broadcast %7 : vector<1x32xf32> to vector<128x32xf32>
    %23 = arith.mulf %21, %22 : vector<128x32xf32>
    %cst_20 = arith.constant dense<0.000000e+00> : vector<128xf32>
    %24 = vector.multi_reduction <add>, %23, %cst_20 [1] : vector<128x32xf32> to vector<128xf32>
    %25 = vector.broadcast %8 : f32 to vector<128xf32>
    %26 = arith.addf %24, %25 : vector<128xf32>
    %27 = vector.shape_cast %26 : vector<128xf32> to vector<1x1x128xf32>
    %c0_21 = arith.constant 0 : index
    %c0_22 = arith.constant 0 : index
    %c0_23 = arith.constant 0 : index
    %28 = vector.load %arg10[%c0_21, %c0_22, %c0_23] : memref<1x1x128xf32, #tpu.memory_space<vmem>>, vector<1x1x128xf32>
    tpu.vector_store %arg10[%c0_21, %c0_22, %c0_23], %27 {strides = array<i32>} : memref<1x1x128xf32, #tpu.memory_space<vmem>>, vector<1x1x128xf32>,
    return
  }
  func.func @transform_0(%arg0: i32) -> (i32, i32) {
    %c0_i32 = arith.constant 0 : i32
    %c0_i32_0 = arith.constant 0 : i32
    return %arg0, %c0_i32 : i32, i32
  }
  func.func @transform_1(%arg0: i32) -> (i32, i32) {
    %c0_i32 = arith.constant 0 : i32
    %c0_i32_0 = arith.constant 0 : i32
    return %arg0, %c0_i32 : i32, i32
  }
  func.func @transform_2(%arg0: i32) -> (i32, i32) {
    %c0_i32 = arith.constant 0 : i32
    %c0_i32_0 = arith.constant 0 : i32
    %c0_i32_1 = arith.constant 0 : i32
    return %c0_i32, %c0_i32_0 : i32, i32
  }
  func.func @transform_3(%arg0: i32) -> (i32, i32) {
    %c0_i32 = arith.constant 0 : i32
    %c0_i32_0 = arith.constant 0 : i32
    %c0_i32_1 = arith.constant 0 : i32
    return %c0_i32, %c0_i32_0 : i32, i32
  }
  func.func @transform_4(%arg0: i32) -> (i32, i32) {
    %c0_i32 = arith.constant 0 : i32
    %c0_i32_0 = arith.constant 0 : i32
    %c0_i32_1 = arith.constant 0 : i32
    return %c0_i32, %c0_i32_0 : i32, i32
  }
  func.func @transform_5(%arg0: i32) -> (i32, i32) {
    %c0_i32 = arith.constant 0 : i32
    %c0_i32_0 = arith.constant 0 : i32
    %c0_i32_1 = arith.constant 0 : i32
    return %c0_i32, %c0_i32_0 : i32, i32
  }
  func.func @transform_6(%arg0: i32) -> (i32, i32) {
    %c0_i32 = arith.constant 0 : i32
    %c0_i32_0 = arith.constant 0 : i32
    %c0_i32_1 = arith.constant 0 : i32
    return %c0_i32, %c0_i32_0 : i32, i32
  }
  func.func @transform_7(%arg0: i32) -> (i32, i32) {
    %c0_i32 = arith.constant 0 : i32
    %c0_i32_0 = arith.constant 0 : i32
    %c0_i32_1 = arith.constant 0 : i32
    return %c0_i32, %c0_i32_0 : i32, i32
  }
  func.func @transform_8(%arg0: i32) -> i32 {
    %c0_i32 = arith.constant 0 : i32
    %c0_i32_0 = arith.constant 0 : i32
    return %c0_i32 : i32
  }
  func.func @transform_9(%arg0: i32) -> (i32, i32, i32) {
    %c0_i32 = arith.constant 0 : i32
    %c0_i32_0 = arith.constant 0 : i32
    %c0_i32_1 = arith.constant 0 : i32
    return %arg0, %c0_i32, %c0_i32_0 : i32, i32, i32
  }
}

</mosaic_0001>

<bundles_post_ra>
// kernel: _forward_edge_pregathered.1
= control target key start
LH: loop header
LB: loop body
LE: loop exit
PB: predicated region body
PF: predicated region fallthrough
CT: control target
= control target key end

     0   :  { %s1159_s0 = inlined_call_operand.vmem [shape: bf16[128,32], index: 0, kind: input, shape index: {}]   ;;  %s1160_s1 = inlined_call_operand.vmem [shape: bf16[128,32], index: 1, kind: input, shape index: {}]   ;;  %s1161_s2 = inlined_call_operand.vmem [shape: bf16[32,128], index: 2, kind: input, shape index: {}]   ;;  %s1162_s3 = inlined_call_operand.vmem [shape: bf16[32,128], index: 3, kind: input, shape index: {}]   ;;  %s1163_s4 = inlined_call_operand.vmem [shape: f32[1,128], index: 4, kind: input, shape index: {}]   ;;  %s1164_s5 = inlined_call_operand.vmem [shape: bf16[128,32], index: 5, kind: input, shape index: {}]   ;;  %s1165_s6 = inlined_call_operand.vmem [shape: f32[1,32], index: 6, kind: input, shape index: {}]   ;;  %s1166_s7 = inlined_call_operand.vmem [shape: f32[1,32], index: 7, kind: input, shape index: {}]   ;;  %s1167_s8 = inlined_call_operand.<no memory space> [shape: f32[1], index: 8, kind: input, shape index: {}]   ;;  %s1168_s9 = inlined_call_operand.hbm [shape: f32[1,1,128], index: 9, kind: output, shape index: {}]  }
   0x1   :  { %v833_v0 = vld [vmem:[%s1162_s3 + $0x8] sm:$0xff]  ;;  %v832_v2 = vld [vmem:[%s1162_s3] sm:$0xff] }
   0x2   :  { %v831_v1 = vld [vmem:[%s1161_s2 + $0x8] sm:$0xff]  ;;  %178 = vmatpush.bf16.msra.mxu0 %v833_v0  ;;  %v830_v3 = vld [vmem:[%s1161_s2] sm:$0xff] }
   0x3   :  { %303 = vmatpush.bf16.msra.mxu1 %v831_v1 }
   0x4   :  { %15 = vsyncpa [#allocation4], 0  ;;  %v822_v4 = vld [vmem:[%s1160_s1] sm:$0xff]  ;;  %vm147_vm0 = vcmask 261120   ;;  %v823_v6 = vld [vmem:[%s1160_s1 + $0x8] sm:$0xff]  ;;  %vm610_vm1 = vcmask 130112  }
   0x5   :  { %v814_v5 = vld [vmem:[%s1159_s0] sm:$0xff]  ;;  %v815_v7 = vld [vmem:[%s1159_s0 + $0x8] sm:$0xff]  ;;  %v824_v8 = vld [vmem:[%s1160_s1 + $0x10] sm:$0xff]  ;;  %vm614_vm2 = vcmask 195712   ;;  %vm618_vm3 = vcmask 261312   ;;  %vm622_vm4 = vcmask 326912  }
   0x6   :  { %179 = vmatpush.bf16.msra.mxu0 %v832_v2  ;;  %v816_v9 = vld [vmem:[%s1159_s0 + $0x10] sm:$0xff]  ;;  %v825_v10 = vld [vmem:[%s1160_s1 + $0x18] sm:$0xff]  ;;  %v826_v12 = vld [vmem:[%s1160_s1 + $0x20] sm:$0xff]  ;;  %vm626_vm5 = vcmask 392512   ;;  %vm630_vm6 = vcmask 458112   ;;  %vm634_vm7 = vcmask 523712  }
   0x7   :  { %304 = vmatpush.bf16.msra.mxu1 %v830_v3  ;;  %v817_v11 = vld [vmem:[%s1159_s0 + $0x18] sm:$0xff]  ;;  %v818_v13 = vld [vmem:[%s1159_s0 + $0x20] sm:$0xff]  ;;  %v827_v15 = vld [vmem:[%s1160_s1 + $0x28] sm:$0xff]  ;;  %vm638_vm8 = vcmask 589312   ;;  %vm642_vm9 = vcmask 654912   ;;  %vm646_vm10 = vcmask 720512  }
   0x8   :  { %v841_v14 = vld [vmem:[%s1164_s5 + $0x38] sm:$0xff]  ;;  %v819_v16 = vld [vmem:[%s1159_s0 + $0x28] sm:$0xff]  ;;  %v840_v17 = vld [vmem:[%s1164_s5 + $0x30] sm:$0xff]  ;;  %vm650_vm11 = vcmask 786112   ;;  %vm654_vm12 = vcmask 851712   ;;  %vm658_vm13 = vcmask 917312  }
   0x9   :  { %726 = vmatmul.msk.bf16.vlgmr.msra.gmra.mxu0 %vm147_vm0, %v822_v4  ;;  %440 = vmatpush.bf16.msra.mxu2 %v841_v14  ;;  %v839_v18 = vld [vmem:[%s1164_s5 + $0x28] sm:$0xff]  ;;  %v838_v19 = vld [vmem:[%s1164_s5 + $0x20] sm:$0xff]  ;;  %v828_v20 = vld [vmem:[%s1160_s1 + $0x30] sm:$0xff]  ;;  %vm662_vm14 = vcmask 982912   ;;  %s677_s22 = sshll.u32 %s1168_s9, 4  ;;  %vm666_vm15 = vcmask 1048512   ;;  %s678_s22 = int_to_ptr.hbm [resolvable:$true] %s677_s22 }
   0xa   :  { %774 = vmatmul.msk.bf16.vlgmr.msra.gmra.mxu1 %vm147_vm0, %v814_v5  ;;  %842 = vmatpush.bf16.msra.mxu3 %v841_v14  ;;  %v820_v21 = vld [vmem:[%s1159_s0 + $0x30] sm:$0xff]  ;;  %v837_v22 = vld [vmem:[%s1164_s5 + $0x18] sm:$0xff]  ;;  %v835_v24 = vld [vmem:[%s1164_s5 + $0x8] sm:$0xff] }
   0xb   :  { %v836_v23 = vld [vmem:[%s1164_s5 + $0x10] sm:$0xff]  ;;  %v834_v25 = vld [vmem:[%s1164_s5] sm:$0xff]  ;;  %v829_v26 = vld [vmem:[%s1160_s1 + $0x38] sm:$0xff] }
   0xc   :  { %v821_v27 = vld [vmem:[%s1159_s0 + $0x38] sm:$0xff]  ;;  %v1034_v31 = vld [vmem:[%s1163_s4] ss:$0 sm:$0xff] }
   0xd   :  { %441 = vmatpush.bf16.msra.mxu2 %v840_v17 }
   0xe   :  { %843 = vmatpush.bf16.msra.mxu3 %v840_v17 }
  0x11   :  { %442 = vmatpush.bf16.msra.mxu2 %v839_v18 }
  0x12   :  { %844 = vmatpush.bf16.msra.mxu3 %v839_v18 }
  0x15   :  { %443 = vmatpush.bf16.msra.mxu2 %v838_v19 }
  0x16   :  { %845 = vmatpush.bf16.msra.mxu3 %v838_v19 }
  0x19   :  { %727 = vmatmul.msk.bf16.gmra.mxu0 %vm147_vm0, %v823_v6  ;;  %444 = vmatpush.bf16.msra.mxu2 %v837_v22 }
  0x1a   :  { %775 = vmatmul.msk.bf16.gmra.mxu1 %vm147_vm0, %v815_v7  ;;  %846 = vmatpush.bf16.msra.mxu3 %v837_v22 }
  0x1d   :  { %445 = vmatpush.bf16.msra.mxu2 %v836_v23 }
  0x1e   :  { %847 = vmatpush.bf16.msra.mxu3 %v836_v23 }
  0x21   :  { %446 = vmatpush.bf16.msra.mxu2 %v835_v24 }
  0x22   :  { %848 = vmatpush.bf16.msra.mxu3 %v835_v24 }
  0x25   :  { %447 = vmatpush.bf16.msra.mxu2 %v834_v25 }
  0x26   :  { %849 = vmatpush.bf16.msra.mxu3 %v834_v25 }
  0x29   :  { %728 = vmatmul.msk.bf16.gmra.mxu0 %vm147_vm0, %v824_v8 }
  0x2a   :  { %776 = vmatmul.msk.bf16.gmra.mxu1 %vm147_vm0, %v816_v9 }
  0x39   :  { %729 = vmatmul.msk.bf16.gmra.mxu0 %vm147_vm0, %v825_v10 }
  0x3a   :  { %777 = vmatmul.msk.bf16.gmra.mxu1 %vm147_vm0, %v817_v11 }
  0x49   :  { %730 = vmatmul.msk.bf16.gmra.mxu0 %vm147_vm0, %v826_v12 }
  0x4a   :  { %778 = vmatmul.msk.bf16.gmra.mxu1 %vm147_vm0, %v818_v13 }
  0x59   :  { %731 = vmatmul.msk.bf16.gmra.mxu0 %vm147_vm0, %v827_v15 }
  0x5a   :  { %779 = vmatmul.msk.bf16.gmra.mxu1 %vm147_vm0, %v819_v16 }
  0x69   :  { %732 = vmatmul.msk.bf16.gmra.mxu0 %vm147_vm0, %v828_v20 }
  0x6a   :  { %780 = vmatmul.msk.bf16.gmra.mxu1 %vm147_vm0, %v820_v21 }
  0x79   :  { %733 = vmatmul.msk.bf16.gmra.mxu0 %vm147_vm0, %v829_v26 }
  0x7a   :  { %781 = vmatmul.msk.bf16.gmra.mxu1 %vm147_vm0, %v821_v27 }
  0x86   :  { %v181_v28 = vpop.f32.mrf.mxu0 }
  0x87   :  { %v306_v29 = vpop.f32.mrf.mxu1 }
  0x88   :  { %v307_v30 = vadd.f32 %v306_v29, %v181_v28 }
  0x8a   :  { %v349_v34 = vadd.f32 %v1034_v31, %v307_v30 }
  0x8c   :  { %v365_v37 = vmax.f32 %v349_v34, 0.0 }
  0x8e   :  { %v183_v32 = vpop.f32.mrf.mxu0 }
  0x8f   :  { %v308_v33 = vpop.f32.mrf.mxu1 }
  0x90   :  { %v309_v35 = vadd.f32 %v308_v33, %v183_v32 }
  0x92   :  { %v350_v36 = vadd.f32 %v1034_v31, %v309_v35 }
  0x94   :  { %v366_v38 = vmax.f32 %v350_v36, 0.0 }
  0x96   :  { %v381_v39 = vpack.c.bf16 %v366_v38, %v365_v37  ;;  %v186_v40 = vpop.f32.mrf.mxu0 }
  0x97   :  { %v311_v41 = vpop.f32.mrf.mxu1 }
  0x98   :  { %448 = vmatmul.bf16.vlgmr.msra.gmra.mxu2 %v381_v39  ;;  %v312_v42 = vadd.f32 %v311_v41, %v186_v40 }
  0x9a   :  { %v351_v45 = vadd.f32 %v1034_v31, %v312_v42 }
  0x9c   :  { %v367_v48 = vmax.f32 %v351_v45, 0.0 }
  0x9e   :  { %v188_v43 = vpop.f32.mrf.mxu0 }
  0x9f   :  { %v313_v44 = vpop.f32.mrf.mxu1 }
  0xa0   :  { %v314_v46 = vadd.f32 %v313_v44, %v188_v43 }
  0xa2   :  { %v352_v47 = vadd.f32 %v1034_v31, %v314_v46 }
  0xa4   :  { %v368_v49 = vmax.f32 %v352_v47, 0.0 }
  0xa6   :  { %v382_v50 = vpack.c.bf16 %v368_v49, %v367_v48  ;;  %v191_v51 = vpop.f32.mrf.mxu0 }
  0xa7   :  { %v316_v52 = vpop.f32.mrf.mxu1 }
  0xa8   :  { %453 = vmatmul.bf16.gmra.mxu2 %v382_v50  ;;  %v317_v53 = vadd.f32 %v316_v52, %v191_v51 }
  0xaa   :  { %v353_v56 = vadd.f32 %v1034_v31, %v317_v53 }
  0xac   :  { %v369_v59 = vmax.f32 %v353_v56, 0.0 }
  0xae   :  { %v193_v54 = vpop.f32.mrf.mxu0 }
  0xaf   :  { %v318_v55 = vpop.f32.mrf.mxu1 }
  0xb0   :  { %v319_v57 = vadd.f32 %v318_v55, %v193_v54  ;;  %v1055_v54 = vld [vmem:[%s1165_s6] ss:$0 sm:$0xff] }
  0xb2   :  { %v354_v58 = vadd.f32 %v1034_v31, %v319_v57  ;;  %v1061_v57 = vld [vmem:[%s1166_s7] ss:$0 sm:$0xff] }
  0xb4   :  { %v370_v60 = vmax.f32 %v354_v58, 0.0 }
  0xb6   :  { %v383_v61 = vpack.c.bf16 %v370_v60, %v369_v59  ;;  %v196_v62 = vpop.f32.mrf.mxu0 }
  0xb7   :  { %v321_v63 = vpop.f32.mrf.mxu1 }
  0xb8   :  { %458 = vmatmul.bf16.gmra.mxu2 %v383_v61  ;;  %v322_v0 = vadd.f32 %v321_v63, %v196_v62 }
  0xba   :  { %v355_v3 = vadd.f32 %v1034_v31, %v322_v0 }
  0xbc   :  { %v371_v6 = vmax.f32 %v355_v3, 0.0 }
  0xbe   :  { %v198_v1 = vpop.f32.mrf.mxu0 }
  0xbf   :  { %v323_v2 = vpop.f32.mrf.mxu1 }
  0xc0   :  { %v324_v4 = vadd.f32 %v323_v2, %v198_v1 }
  0xc2   :  { %v356_v5 = vadd.f32 %v1034_v31, %v324_v4 }
  0xc4   :  { %v372_v7 = vmax.f32 %v356_v5, 0.0 }
  0xc6   :  { %v384_v8 = vpack.c.bf16 %v372_v7, %v371_v6  ;;  %v201_v9 = vpop.f32.mrf.mxu0 }
  0xc7   :  { %v326_v10 = vpop.f32.mrf.mxu1 }
  0xc8   :  { %463 = vmatmul.bf16.gmra.mxu2 %v384_v8  ;;  %v327_v11 = vadd.f32 %v326_v10, %v201_v9 }
  0xca   :  { %v357_v14 = vadd.f32 %v1034_v31, %v327_v11 }
  0xcc   :  { %v373_v17 = vmax.f32 %v357_v14, 0.0 }
  0xce   :  { %v203_v12 = vpop.f32.mrf.mxu0 }
  0xcf   :  { %v328_v13 = vpop.f32.mrf.mxu1 }
  0xd0   :  { %v329_v15 = vadd.f32 %v328_v13, %v203_v12 }
  0xd2   :  { %v358_v16 = vadd.f32 %v1034_v31, %v329_v15 }
  0xd4   :  { %v374_v18 = vmax.f32 %v358_v16, 0.0 }
  0xd6   :  { %v385_v19 = vpack.c.bf16 %v374_v18, %v373_v17  ;;  %v206_v20 = vpop.f32.mrf.mxu0 }
  0xd7   :  { %v331_v21 = vpop.f32.mrf.mxu1 }
  0xd8   :  { %468 = vmatmul.bf16.gmra.mxu2 %v385_v19  ;;  %v332_v22 = vadd.f32 %v331_v21, %v206_v20 }
  0xda   :  { %v359_v25 = vadd.f32 %v1034_v31, %v332_v22 }
  0xdc   :  { %v375_v28 = vmax.f32 %v359_v25, 0.0 }
  0xde   :  { %v208_v23 = vpop.f32.mrf.mxu0 }
  0xdf   :  { %v333_v24 = vpop.f32.mrf.mxu1 }
  0xe0   :  { %v334_v26 = vadd.f32 %v333_v24, %v208_v23 }
  0xe2   :  { %v360_v27 = vadd.f32 %v1034_v31, %v334_v26 }
  0xe4   :  { %v376_v29 = vmax.f32 %v360_v27, 0.0 }
  0xe6   :  { %v386_v30 = vpack.c.bf16 %v376_v29, %v375_v28  ;;  %v211_v32 = vpop.f32.mrf.mxu0 }
  0xe7   :  { %v336_v33 = vpop.f32.mrf.mxu1 }
  0xe8   :  { %473 = vmatmul.bf16.gmra.mxu2 %v386_v30  ;;  %v337_v34 = vadd.f32 %v336_v33, %v211_v32 }
  0xea   :  { %v361_v37 = vadd.f32 %v1034_v31, %v337_v34 }
  0xec   :  { %v377_v40 = vmax.f32 %v361_v37, 0.0 }
  0xee   :  { %v213_v35 = vpop.f32.mrf.mxu0 }
  0xef   :  { %v338_v36 = vpop.f32.mrf.mxu1 }
  0xf0   :  { %v339_v38 = vadd.f32 %v338_v36, %v213_v35 }
  0xf2   :  { %v362_v39 = vadd.f32 %v1034_v31, %v339_v38 }
  0xf4   :  { %v378_v41 = vmax.f32 %v362_v39, 0.0 }
  0xf6   :  { %v387_v42 = vpack.c.bf16 %v378_v41, %v377_v40  ;;  %v216_v43 = vpop.f32.mrf.mxu0 }
  0xf7   :  { %v341_v44 = vpop.f32.mrf.mxu1 }
  0xf8   :  { %478 = vmatmul.bf16.vlgmr.msra.gmra.mxu3 %v387_v42  ;;  %v342_v45 = vadd.f32 %v341_v44, %v216_v43 }
  0xfa   :  { %v363_v48 = vadd.f32 %v1034_v31, %v342_v45 }
  0xfc   :  { %v379_v51 = vmax.f32 %v363_v48, 0.0 }
  0xfe   :  { %v218_v46 = vpop.f32.mrf.mxu0 }
  0xff   :  { %v343_v47 = vpop.f32.mrf.mxu1 }
 0x100   :  { %v344_v49 = vadd.f32 %v343_v47, %v218_v46 }
 0x102   :  { %v364_v50 = vadd.f32 %v1034_v31, %v344_v49 }
 0x104   :  { %v380_v52 = vmax.f32 %v364_v50, 0.0 }
 0x106   :  { %v388_v53 = vpack.c.bf16 %v380_v52, %v379_v51 }
 0x108   :  { %483 = vmatmul.bf16.gmra.mxu3 %v388_v53 }
 0x11b   :  { %v449_v55 = vpop.f32.mrf.mxu2 }
 0x11c   :  { %v450_v56 = vadd.f32 %v1055_v54, %v449_v55 }
 0x11e   :  { %v489_v58 = vmax.f32 %v450_v56, 0.0 }
 0x120   :  { %v508_v31 = vmul.f32 %v1061_v57, %v489_v58 }
 0x122   :  { %v524_v59 = vsel %vm147_vm0, %v508_v31, 0.0 }
 0x123   :  { %v451_v60 = vpop.f32.mrf.mxu2  ;;  %525 = vadd.xlane.f32.xlu0 %v524_v59 }
 0x124   :  { %v452_v61 = vadd.f32 %v1055_v54, %v451_v60 }
 0x126   :  { %v490_v62 = vmax.f32 %v452_v61, 0.0 }
 0x128   :  { %v509_v63 = vmul.f32 %v1061_v57, %v490_v62 }
 0x12a   :  { %v527_v0 = vsel %vm147_vm0, %v509_v63, 0.0 }
 0x12b   :  { %v454_v1 = vpop.f32.mrf.mxu2  ;;  %528 = vadd.xlane.f32.xlu0 %v527_v0 }
 0x12c   :  { %v455_v2 = vadd.f32 %v1055_v54, %v454_v1 }
 0x12e   :  { %v491_v3 = vmax.f32 %v455_v2, 0.0 }
 0x130   :  { %v510_v4 = vmul.f32 %v1061_v57, %v491_v3 }
 0x132   :  { %v530_v5 = vsel %vm147_vm0, %v510_v4, 0.0 }
 0x133   :  { %v456_v6 = vpop.f32.mrf.mxu2  ;;  %531 = vadd.xlane.f32.xlu1 %v530_v5 }
 0x134   :  { %v457_v7 = vadd.f32 %v1055_v54, %v456_v6 }
 0x136   :  { %v492_v8 = vmax.f32 %v457_v7, 0.0 }
 0x138   :  { %v511_v9 = vmul.f32 %v1061_v57, %v492_v8 }
 0x13a   :  { %v533_v10 = vsel %vm147_vm0, %v511_v9, 0.0 }
 0x13b   :  { %v459_v11 = vpop.f32.mrf.mxu2  ;;  %534 = vadd.xlane.f32.xlu1 %v533_v10 }
 0x13c   :  { %v460_v12 = vadd.f32 %v1055_v54, %v459_v11 }
 0x13e   :  { %v493_v13 = vmax.f32 %v460_v12, 0.0 }
 0x140   :  { %v512_v14 = vmul.f32 %v1061_v57, %v493_v13 }
 0x142   :  { %v536_v15 = vsel %vm147_vm0, %v512_v14, 0.0 }
 0x143   :  { %v461_v16 = vpop.f32.mrf.mxu2  ;;  %537 = vadd.xlane.f32.xlu2 %v536_v15  ;;  %v605_v15 = vlaneseq }
 0x144   :  { %v462_v17 = vadd.f32 %v1055_v54, %v461_v16 }
 0x146   :  { %v494_v18 = vmax.f32 %v462_v17, 0.0 }
 0x148   :  { %v513_v19 = vmul.f32 %v1061_v57, %v494_v18 }
 0x14a   :  { %v539_v20 = vsel %vm147_vm0, %v513_v19, 0.0  ;;  %v1110_v19 = vand.u32 127, %v605_v15 }
 0x14b   :  { %v464_v21 = vpop.f32.mrf.mxu2  ;;  %540 = vadd.xlane.f32.xlu2 %v539_v20 }
 0x14c   :  { %v465_v22 = vadd.f32 %v1055_v54, %v464_v21  ;;  %v664_v15 = vadd.s32 4294967176, %v1110_v19 }
 0x14e   :  { %v495_v23 = vmax.f32 %v465_v22, 0.0  ;;  %v612_v22 = vadd.s32 4294967280, %v1110_v19 }
 0x150   :  { %v514_v24 = vmul.f32 %v1061_v57, %v495_v23 }
 0x152   :  { %v542_v25 = vsel %vm147_vm0, %v514_v24, 0.0  ;;  %v616_v24 = vadd.s32 4294967272, %v1110_v19 }
 0x153   :  { %v466_v26 = vpop.f32.mrf.mxu2  ;;  %543 = vadd.xlane.f32.xlu0 %v542_v25 }
 0x154   :  { %v467_v27 = vadd.f32 %v1055_v54, %v466_v26 }
 0x156   :  { %v496_v28 = vmax.f32 %v467_v27, 0.0 }
 0x158   :  { %v515_v29 = vmul.f32 %v1061_v57, %v496_v28 }
 0x15a   :  { %v545_v30 = vsel %vm147_vm0, %v515_v29, 0.0  ;;  %v620_v29 = vadd.s32 4294967264, %v1110_v19 }
 0x15b   :  { %v469_v32 = vpop.f32.mrf.mxu2  ;;  %546 = vadd.xlane.f32.xlu1 %v545_v30 }
 0x15c   :  { %v470_v33 = vadd.f32 %v1055_v54, %v469_v32 }
 0x15e   :  { %v497_v34 = vmax.f32 %v470_v33, 0.0 }
 0x160   :  { %v516_v35 = vmul.f32 %v1061_v57, %v497_v34 }
 0x162   :  { %v548_v36 = vsel %vm147_vm0, %v516_v35, 0.0 }
 0x163   :  { %v471_v37 = vpop.f32.mrf.mxu2  ;;  %549 = vadd.xlane.f32.xlu2 %v548_v36  ;;  %v624_v36 = vadd.s32 4294967256, %v1110_v19 }
 0x164   :  { %v472_v38 = vadd.f32 %v1055_v54, %v471_v37 }
 0x166   :  { %v498_v39 = vmax.f32 %v472_v38, 0.0 }
 0x168   :  { %v517_v40 = vmul.f32 %v1061_v57, %v498_v39  ;;  %v628_v39 = vadd.s32 4294967248, %v1110_v19 }
 0x16a   :  { %v551_v41 = vsel %vm147_vm0, %v517_v40, 0.0 }
 0x16b   :  { %v474_v42 = vpop.f32.mrf.mxu2  ;;  %552 = vadd.xlane.f32.xlu0 %v551_v41 }
 0x16c   :  { %v475_v43 = vadd.f32 %v1055_v54, %v474_v42  ;;  %v632_v42 = vadd.s32 4294967240, %v1110_v19 }
 0x16e   :  { %v499_v44 = vmax.f32 %v475_v43, 0.0 }
 0x170   :  { %v518_v45 = vmul.f32 %v1061_v57, %v499_v44 }
 0x172   :  { %v554_v46 = vsel %vm147_vm0, %v518_v45, 0.0  ;;  %v636_v45 = vadd.s32 4294967232, %v1110_v19 }
 0x173   :  { %v476_v47 = vpop.f32.mrf.mxu2  ;;  %555 = vadd.xlane.f32.xlu1 %v554_v46 }
 0x174   :  { %v477_v48 = vadd.f32 %v1055_v54, %v476_v47 }
 0x176   :  { %v500_v49 = vmax.f32 %v477_v48, 0.0 }
 0x178   :  { %v519_v50 = vmul.f32 %v1061_v57, %v500_v49  ;;  %v640_v49 = vadd.s32 4294967224, %v1110_v19 }
 0x17a   :  { %v557_v51 = vsel %vm147_vm0, %v519_v50, 0.0 }
 0x17b   :  { %v479_v52 = vpop.f32.mrf.mxu3  ;;  %558 = vadd.xlane.f32.xlu2 %v557_v51 }
 0x17c   :  { %v480_v53 = vadd.f32 %v1055_v54, %v479_v52 }
 0x17e   :  { %v501_v55 = vmax.f32 %v480_v53, 0.0  ;;  %v644_v53 = vadd.s32 4294967216, %v1110_v19 }
 0x180   :  { %v520_v56 = vmul.f32 %v1061_v57, %v501_v55 }
 0x182   :  { %v560_v58 = vsel %vm147_vm0, %v520_v56, 0.0 }
 0x183   :  { %v481_v31 = vpop.f32.mrf.mxu3  ;;  %561 = vadd.xlane.f32.xlu0 %v560_v58 }
 0x184   :  { %v482_v59 = vadd.f32 %v1055_v54, %v481_v31 }
 0x186   :  { %v502_v60 = vmax.f32 %v482_v59, 0.0  ;;  %v648_v59 = vadd.s32 4294967208, %v1110_v19 }
 0x188   :  { %v521_v61 = vmul.f32 %v1061_v57, %v502_v60 }
 0x18a   :  { %v563_v62 = vsel %vm147_vm0, %v521_v61, 0.0 }
 0x18b   :  { %v484_v63 = vpop.f32.mrf.mxu3  ;;  %564 = vadd.xlane.f32.xlu1 %v563_v62 }
 0x18c   :  { %v485_v0 = vadd.f32 %v1055_v54, %v484_v63  ;;  %v652_v63 = vadd.s32 4294967200, %v1110_v19 }
 0x18e   :  { %v503_v1 = vmax.f32 %v485_v0, 0.0 }
 0x190   :  { %v522_v2 = vmul.f32 %v1061_v57, %v503_v1 }
 0x192   :  { %v566_v3 = vsel %vm147_vm0, %v522_v2, 0.0 }
 0x193   :  { %v486_v4 = vpop.f32.mrf.mxu3  ;;  %567 = vadd.xlane.f32.xlu2 %v566_v3  ;;  %v656_v3 = vadd.s32 4294967192, %v1110_v19 }
 0x194   :  { %v487_v5 = vadd.f32 %v1055_v54, %v486_v4  ;;  %v1115_v54 = vstv %s1167_s8  ;;  %s880_s8 = smov [#allocation3]  }
 0x195   :  { %s675_s3 = sshll.u32 %s880_s8, 4  ;;  %s676_s3 = int_to_ptr.vmem [resolvable:$true] %s675_s3 }
 0x196   :  { %v504_v6 = vmax.f32 %v487_v5, 0.0  ;;  %v526_v9 = vpop.xlane.xlu0 %525 }
 0x197   :  { %v573_v21 = vadd.f32 %v1115_v54, %v526_v9 }
 0x198   :  { %v523_v7 = vmul.f32 %v1061_v57, %v504_v6  ;;  %v608_v57 = vadd.s32 4294967288, %v1110_v19 }
 0x199   :  { %v607_v33 = vperm.slane %v573_v21, %v1110_v19 }
 0x19a   :  { %v569_v8 = vsel %vm147_vm0, %v523_v7, 0.0  ;;  %v660_v7 = vadd.s32 4294967184, %v1110_v19 }
 0x19b   :  { %570 = vadd.xlane.f32.xlu0 %v569_v8 }
 0x19e   :  { %v529_v12 = vpop.xlane.xlu0 %528 }
 0x19f   :  { %v574_v20 = vadd.f32 %v1115_v54, %v529_v12 }
 0x1a1   :  { %v609_v27 = vperm.slane %v574_v20, %v608_v57 }
 0x1a3   :  { %v611_v38 = vsel %vm610_vm1, %v609_v27, %v607_v33 }
 0x1a6   :  { %v532_v10 = vpop.xlane.xlu1 %531 }
 0x1a7   :  { %v575_v23 = vadd.f32 %v1115_v54, %v532_v10 }
 0x1a9   :  { %v613_v34 = vperm.slane %v575_v23, %v612_v22 }
 0x1ab   :  { %v615_v44 = vsel %vm614_vm2, %v613_v34, %v611_v38 }
 0x1ae   :  { %v535_v13 = vpop.xlane.xlu1 %534 }
 0x1af   :  { %v576_v25 = vadd.f32 %v1115_v54, %v535_v13 }
 0x1b1   :  { %v617_v35 = vperm.slane %v576_v25, %v616_v24 }
 0x1b3   :  { %v619_v47 = vsel %vm618_vm3, %v617_v35, %v615_v44 }
 0x1b6   :  { %v538_v11 = vpop.xlane.xlu2 %537 }
 0x1b7   :  { %v577_v30 = vadd.f32 %v1115_v54, %v538_v11 }
 0x1b9   :  { %v621_v41 = vperm.slane %v577_v30, %v620_v29 }
 0x1bb   :  { %v623_v58 = vsel %vm622_vm4, %v621_v41, %v619_v47 }
 0x1be   :  { %v541_v14 = vpop.xlane.xlu2 %540 }
 0x1bf   :  { %v578_v37 = vadd.f32 %v1115_v54, %v541_v14 }
 0x1c1   :  { %v625_v48 = vperm.slane %v578_v37, %v624_v36 }
 0x1c3   :  { %v627_v1 = vsel %vm626_vm5, %v625_v48, %v623_v58 }
 0x1c6   :  { %v544_v16 = vpop.xlane.xlu0 %543 }
 0x1c7   :  { %v579_v40 = vadd.f32 %v1115_v54, %v544_v16 }
 0x1c9   :  { %v629_v52 = vperm.slane %v579_v40, %v628_v39 }
 0x1cb   :  { %v631_v5 = vsel %vm630_vm6, %v629_v52, %v627_v1 }
 0x1ce   :  { %v547_v17 = vpop.xlane.xlu1 %546 }
 0x1cf   :  { %v580_v43 = vadd.f32 %v1115_v54, %v547_v17 }
 0x1d1   :  { %v633_v31 = vperm.slane %v580_v43, %v632_v42 }
 0x1d3   :  { %v635_v9 = vsel %vm634_vm7, %v633_v31, %v631_v5 }
 0x1d6   :  { %v550_v18 = vpop.xlane.xlu2 %549 }
 0x1d7   :  { %v581_v46 = vadd.f32 %v1115_v54, %v550_v18 }
 0x1d9   :  { %v637_v62 = vperm.slane %v581_v46, %v636_v45 }
 0x1db   :  { %v639_v11 = vsel %vm638_vm8, %v637_v62, %v635_v9 }
 0x1de   :  { %v553_v26 = vpop.xlane.xlu0 %552 }
 0x1df   :  { %v582_v50 = vadd.f32 %v1115_v54, %v553_v26 }
 0x1e1   :  { %v641_v2 = vperm.slane %v582_v50, %v640_v49 }
 0x1e3   :  { %v643_v13 = vsel %vm642_vm9, %v641_v2, %v639_v11 }
 0x1e6   :  { %v556_v28 = vpop.xlane.xlu1 %555 }
 0x1e7   :  { %v583_v55 = vadd.f32 %v1115_v54, %v556_v28 }
 0x1e9   :  { %v645_v6 = vperm.slane %v583_v55, %v644_v53 }
 0x1eb   :  { %v647_v16 = vsel %vm646_vm10, %v645_v6, %v643_v13 }
 0x1ee   :  { %v559_v32 = vpop.xlane.xlu2 %558 }
 0x1ef   :  { %v584_v60 = vadd.f32 %v1115_v54, %v559_v32 }
 0x1f1   :  { %v649_v10 = vperm.slane %v584_v60, %v648_v59 }
 0x1f3   :  { %v651_v57 = vsel %vm650_vm11, %v649_v10, %v647_v16 }
 0x1f6   :  { %v562_v51 = vpop.xlane.xlu0 %561 }
 0x1f7   :  { %v585_v0 = vadd.f32 %v1115_v54, %v562_v51 }
 0x1f9   :  { %v653_v12 = vperm.slane %v585_v0, %v652_v63 }
 0x1fb   :  { %v655_v21 = vsel %vm654_vm12, %v653_v12, %v651_v57 }
 0x1fe   :  { %v565_v56 = vpop.xlane.xlu1 %564 }
 0x1ff   :  { %v586_v4 = vadd.f32 %v1115_v54, %v565_v56 }
 0x201   :  { %v657_v14 = vperm.slane %v586_v4, %v656_v3 }
 0x203   :  { %v659_v22 = vsel %vm658_vm13, %v657_v14, %v655_v21 }
 0x206   :  { %v568_v61 = vpop.xlane.xlu2 %567 }
 0x207   :  { %v587_v8 = vadd.f32 %v1115_v54, %v568_v61 }
 0x209   :  { %v661_v17 = vperm.slane %v587_v8, %v660_v7 }
 0x20b   :  { %v663_v24 = vsel %vm662_vm14, %v661_v17, %v659_v22 }
 0x20e   :  { %v571_v18 = vpop.xlane.xlu0 %570 }
 0x20f   :  { %v588_v20 = vadd.f32 %v1115_v54, %v571_v18 }
 0x211   :  { %v665_v23 = vperm.slane %v588_v20, %v664_v15 }
 0x213   :  { %v667_v19 = vsel %vm666_vm15, %v665_v23, %v663_v24 }
 0x214   :  { %669 = vst [vmem:[#allocation3] sm:$0x1] %v667_v19 }
 0x215   :  { %680 = dma.vmem_to_hbm [thread:$0]  %s676_s3, 16, %s678_s22, [#allocation4]  }
 0x216   :  { %878 = dma.done.wait [#allocation4], 16  }
 0x217   :  { %879 = vsyncadd [#allocation4], 4294967280 }
 0x218   :  { %685 = vsyncpa [#allocation4], 1 }

</bundles_post_ra>
